<compile_context>
chip_gen: v6e
topology: v6e:2x2x1
jax: 0.10.0
libtpu: 0.0.40
codegen_flags: <defaults>
</compile_context>

<pallas_src>
import functools

import jax
import jax.numpy as jnp
from jax import lax
from jax.experimental import pallas as pl
from jax.experimental.pallas import tpu as pltpu

_EPS = 1e-8  # matches torch F.cosine_similarity default eps


def _round_up(x, m):
    return ((x + m - 1) // m) * m


def _unit_rows_f32(x):
    """Row-normalize x in f32: rsqrt(max(sum_sq, eps^2)) == 1/max(||x||, eps)."""
    xf = x.astype(jnp.float32)
    ss = jnp.sum(xf * xf, axis=-1, keepdims=True)
    inv = lax.rsqrt(jnp.maximum(ss, _EPS * _EPS))
    return xf * inv


def _gram_kl_rows(s_t, s_p, col_mask=None):
    """Row-wise KL(softmax(s_t) || softmax(s_p)) for cosine logits in [-1, 1].

    exp cannot overflow, so the row-max subtraction is skipped (saves two lane
    reductions and two (bm, N) broadcast-subtract passes per step).
    """
    e_t = jnp.exp(s_t)
    e_p = jnp.exp(s_p)
    if col_mask is not None:
        e_t = e_t * col_mask
        e_p = e_p * col_mask
    z_t = jnp.sum(e_t, axis=-1, keepdims=True)
    z_p = jnp.sum(e_p, axis=-1, keepdims=True)
    # sum_j softmax(t)_j (t_j - p_j) - lse(t) + lse(p)
    weighted = jnp.sum(e_t * (s_t - s_p), axis=-1, keepdims=True)
    return weighted / z_t - jnp.log(z_t) + jnp.log(z_p)


def _shifted_kl_rows(t_logits, p_logits):
    """Row-wise KL with max-shift (raw logits are unbounded)."""
    m_t = jnp.max(t_logits, axis=-1, keepdims=True)
    e_t = jnp.exp(t_logits - m_t)
    z_t = jnp.sum(e_t, axis=-1, keepdims=True)
    m_p = jnp.max(p_logits, axis=-1, keepdims=True)
    z_p = jnp.sum(jnp.exp(p_logits - m_p), axis=-1, keepdims=True)
    weighted = jnp.sum(e_t * (t_logits - p_logits), axis=-1, keepdims=True)
    lse_t = m_t + jnp.log(z_t)
    lse_p = m_p + jnp.log(z_p)
    return weighted / z_t - lse_t + lse_p


def _loss_kernel(t_ref, p_ref, o_ref, t_hat_ref, p_hat_ref, *, row_block, n_valid):
    i = pl.program_id(0)
    n_pad = t_ref.shape[0]

    @pl.when(i == 0)
    def _init():
        # Hoisted: normalize both full operands ONCE into persistent VMEM
        # scratch (bf16 when inputs are f32 -> bf16-native MXU operands).
        t_hat_ref[...] = _unit_rows_f32(t_ref[...]).astype(t_hat_ref.dtype)
        p_hat_ref[...] = _unit_rows_f32(p_ref[...]).astype(p_hat_ref.dtype)
        o_ref[...] = jnp.zeros_like(o_ref)

    row_start = pl.multiple_of(i * row_block, row_block)

    # Row blocks come straight from the pre-normalized scratch.
    t_hat_rows = t_hat_ref[pl.ds(row_start, row_block), :]
    p_hat_rows = p_hat_ref[pl.ds(row_start, row_block), :]

    # Contract the last dim of both operands: no XLU transpose before the MXU.
    dn = (((1,), (1,)), ((), ()))
    s_t = lax.dot_general(t_hat_rows, t_hat_ref[...], dn,
                          preferred_element_type=jnp.float32)   # (bm, n_pad)
    s_p = lax.dot_general(p_hat_rows, p_hat_ref[...], dn,
                          preferred_element_type=jnp.float32)   # (bm, n_pad)

    # Mask out padded columns of the Gram matrices (only if padding exists).
    if n_valid < n_pad:
        col_mask = (lax.broadcasted_iota(jnp.int32, (1, n_pad), 1)
                    < n_valid).astype(jnp.float32)
    else:
        col_mask = None
    kl_gram = _gram_kl_rows(s_t, s_p, col_mask)                 # (bm, 1)

    # Second KL term on the raw (un-normalized) rows, fused into the same pass.
    t_rows = t_ref[pl.ds(row_start, row_block), :].astype(jnp.float32)
    p_rows = p_ref[pl.ds(row_start, row_block), :].astype(jnp.float32)
    kl_raw = _shifted_kl_rows(t_rows, p_rows)                   # (bm, 1)

    kl_rows = kl_gram + kl_raw
    if n_valid < n_pad:
        # Padded (zero) rows contribute exactly 0 anyway; mask defensively.
        row_ids = row_start + lax.broadcasted_iota(jnp.int32, (row_block, 1), 0)
        kl_rows = jnp.where(row_ids < n_valid, kl_rows, 0.0)

    # Pure sum across row blocks; the 1/N scaling happens once in the wrapper.
    o_ref[...] += jnp.reshape(jnp.sum(kl_rows), (1, 1))


def _default_row_block(n):
    if n <= 256:
        return _round_up(n, 8)   # single row-block pass
    return 128                   # MXU-friendly, fits v7x's smaller VMEM too


def _vmem_limit_bytes():
    cap = 128 * 1024 * 1024
    try:
        cap = int(pltpu.get_tpu_info().vmem_capacity_bytes)
    except Exception:
        pass
    # Leave ~24 MiB headroom for Mosaic internal scratch / spills; cap at 100 MiB.
    return int(max(32 * 1024 * 1024,
                   min(cap - 24 * 1024 * 1024, 100 * 1024 * 1024)))


def contrastive_kld_cosine_similarity_loss(target, predicted, *, row_block=None):
    """target, predicted: float arrays of shape (N, D). Returns scalar f32."""
    assert target.shape == predicted.shape and target.ndim == 2
    n, d = target.shape
    if row_block is None:
        row_block = _default_row_block(n)
    row_block = int(row_block)

    # Pad rows up to a multiple of the row block (padded rows masked in-kernel).
    n_pad = _round_up(n, row_block)
    if n_pad != n:
        pad = ((0, n_pad - n), (0, 0))
        target_p = jnp.pad(target, pad)
        predicted_p = jnp.pad(predicted, pad)
    else:
        target_p, predicted_p = target, predicted

    # bf16 operands for the Gram matmul when inputs are f32 (f32 accumulation).
    gemm_dtype = jnp.bfloat16 if target.dtype == jnp.float32 else target.dtype

    kernel = functools.partial(_loss_kernel, row_block=row_block, n_valid=n)
    out = pl.pallas_call(
        kernel,
        out_shape=jax.ShapeDtypeStruct((1, 1), jnp.float32),
        grid=(n_pad // row_block,),
        in_specs=[
            # Whole operands resident in VMEM once: no per-step double buffer.
            pl.BlockSpec(memory_space=pltpu.MemorySpace.VMEM),
            pl.BlockSpec(memory_space=pltpu.MemorySpace.VMEM),
        ],
        out_specs=pl.BlockSpec((1, 1), lambda i: (0, 0)),
        scratch_shapes=[
            pltpu.VMEM((n_pad, d), gemm_dtype),   # normalized target (once)
            pltpu.VMEM((n_pad, d), gemm_dtype),   # normalized predicted (once)
        ],
        compiler_params=pltpu.CompilerParams(
            # Row-block axis accumulates into the scalar output -> reduction.
            dimension_semantics=("arbitrary",),
            vmem_limit_bytes=_vmem_limit_bytes(),
        ),
    )(target_p, predicted_p)
    return out[0, 0] / jnp.float32(n)


def _reference_loss(target, predicted):
    # Pure-JAX reference (same math, outside Pallas) for a sanity check.
    t = target.astype(jnp.float32)
    p = predicted.astype(jnp.float32)

    def cos_mat(x):
        nrm = jnp.maximum(jnp.sqrt(jnp.sum(x * x, axis=-1, keepdims=True)), _EPS)
        xh = x / nrm
        return xh @ xh.T

    def kl(a, b):
        la = jax.nn.log_softmax(a, axis=-1)
        lb = jax.nn.log_softmax(b, axis=-1)
        return jnp.mean(jnp.sum(jnp.exp(la) * (la - lb), axis=-1))

    return kl(cos_mat(t), cos_mat(p)) + kl(t, p)


if __name__ == "__main__":
    key = jax.random.PRNGKey(0)
    k1, k2, k3, k4 = jax.random.split(key, 4)

    # Multi-step accumulation path: 96 vectors of dim 32, row_block=32 -> 3 steps.
    t1 = jax.random.normal(k1, (96, 32), dtype=jnp.float32)
    p1 = jax.random.normal(k2, (96, 32), dtype=jnp.float32)
    loss1 = jax.block_until_ready(
        contrastive_kld_cosine_similarity_loss(t1, p1, row_block=32))
    ref1 = jax.block_until_ready(_reference_loss(t1, p1))
    assert jnp.isfinite(loss1), loss1
    assert jnp.allclose(loss1, ref1, rtol=5e-3, atol=1e-4), (loss1, ref1)

    # Padding/masking path: awkward N=50 (padded to 56), default row block.
    t2 = jax.random.normal(k3, (50, 24), dtype=jnp.float32)
    p2 = jax.random.normal(k4, (50, 24), dtype=jnp.float32)
    loss2 = jax.block_until_ready(contrastive_kld_cosine_similarity_loss(t2, p2))
    ref2 = jax.block_until_ready(_reference_loss(t2, p2))
    assert jnp.isfinite(loss2), loss2
    assert jnp.allclose(loss2, ref2, rtol=5e-3, atol=1e-4), (loss2, ref2)

    print("KERNEL_OK")
</pallas_src>

<mosaic_0001>
module attributes {stable_mosaic.version = 11 : i64} {
  func.func @_loss_kernel(%arg0: i32, %arg1: memref<96x32xf32, #tpu.memory_space<vmem>>, %arg2: memref<96x32xf32, #tpu.memory_space<vmem>>, %arg3: memref<1x1xf32, #tpu.memory_space<vmem>>, %arg4: memref<96x32xbf16, #tpu.memory_space<vmem>>, %arg5: memref<96x32xbf16, #tpu.memory_space<vmem>>) attributes {dimension_semantics = [#tpu.dimension_semantics<arbitrary>], iteration_bounds = array<i64: 3>, scalar_prefetch = 0 : i64, scratch_operands = 2 : i64, tpu.core_type = #tpu.core_type<tc>, window_params = [{pipeline_mode = #tpu.pipeline_mode<synchronous>, transform_indices = @transform_0, window_bounds = array<i64: 96, 32>}, {pipeline_mode = #tpu.pipeline_mode<synchronous>, transform_indices = @transform_1, window_bounds = array<i64: 96, 32>}, {pipeline_mode = #tpu.pipeline_mode<synchronous>, transform_indices = @transform_2, window_bounds = array<i64: 1, 1>}]} {
    %c0_i32 = arith.constant 0 : i32
    %0 = arith.cmpi eq, %arg0, %c0_i32 : i32
    %1 = arith.extui %0 : i1 to i32
    %c0_i32_0 = arith.constant 0 : i32
    %2 = arith.cmpi ne, %1, %c0_i32_0 : i32
    scf.if %2 {
      %c0_22 = arith.constant 0 : index
      %c0_23 = arith.constant 0 : index
      %66 = vector.load %arg1[%c0_22, %c0_23] : memref<96x32xf32, #tpu.memory_space<vmem>>, vector<96x32xf32>
      %67 = arith.mulf %66, %66 : vector<96x32xf32>
      %cst_24 = arith.constant dense<0.000000e+00> : vector<96xf32>
      %68 = vector.multi_reduction <add>, %67, %cst_24 [1] : vector<96x32xf32> to vector<96xf32>
      %69 = vector.shape_cast %68 : vector<96xf32> to vector<96x1xf32>
      %cst_25 = arith.constant 1.000000e-16 : f32
      %70 = vector.broadcast %cst_25 : f32 to vector<96x1xf32>
      %71 = arith.maximumf %69, %70 : vector<96x1xf32>
      %72 = math.rsqrt %71 : vector<96x1xf32>
      %73 = vector.broadcast %72 : vector<96x1xf32> to vector<96x32xf32>
      %74 = arith.mulf %66, %73 : vector<96x32xf32>
      %75 = arith.truncf %74 : vector<96x32xf32> to vector<96x32xbf16>
      %c0_26 = arith.constant 0 : index
      %c0_27 = arith.constant 0 : index
      %76 = vector.load %arg4[%c0_26, %c0_27] : memref<96x32xbf16, #tpu.memory_space<vmem>>, vector<96x32xbf16>
      tpu.vector_store %arg4[%c0_26, %c0_27], %75 {strides = array<i32>} : memref<96x32xbf16, #tpu.memory_space<vmem>>, vector<96x32xbf16>,
      %c0_28 = arith.constant 0 : index
      %c0_29 = arith.constant 0 : index
      %77 = vector.load %arg2[%c0_28, %c0_29] : memref<96x32xf32, #tpu.memory_space<vmem>>, vector<96x32xf32>
      %78 = arith.mulf %77, %77 : vector<96x32xf32>
      %cst_30 = arith.constant dense<0.000000e+00> : vector<96xf32>
      %79 = vector.multi_reduction <add>, %78, %cst_30 [1] : vector<96x32xf32> to vector<96xf32>
      %80 = vector.shape_cast %79 : vector<96xf32> to vector<96x1xf32>
      %cst_31 = arith.constant 1.000000e-16 : f32
      %81 = vector.broadcast %cst_31 : f32 to vector<96x1xf32>
      %82 = arith.maximumf %80, %81 : vector<96x1xf32>
      %83 = math.rsqrt %82 : vector<96x1xf32>
      %84 = vector.broadcast %83 : vector<96x1xf32> to vector<96x32xf32>
      %85 = arith.mulf %77, %84 : vector<96x32xf32>
      %86 = arith.truncf %85 : vector<96x32xf32> to vector<96x32xbf16>
      %c0_32 = arith.constant 0 : index
      %c0_33 = arith.constant 0 : index
      %87 = vector.load %arg5[%c0_32, %c0_33] : memref<96x32xbf16, #tpu.memory_space<vmem>>, vector<96x32xbf16>
      tpu.vector_store %arg5[%c0_32, %c0_33], %86 {strides = array<i32>} : memref<96x32xbf16, #tpu.memory_space<vmem>>, vector<96x32xbf16>,
      %cst_34 = arith.constant 0.000000e+00 : f32
      %88 = vector.broadcast %cst_34 : f32 to vector<1x1xf32>
      %c0_35 = arith.constant 0 : index
      %c0_36 = arith.constant 0 : index
      %89 = vector.load %arg3[%c0_35, %c0_36] : memref<1x1xf32, #tpu.memory_space<vmem>>, vector<1x1xf32>
      tpu.vector_store %arg3[%c0_35, %c0_36], %88 {strides = array<i32>} : memref<1x1xf32, #tpu.memory_space<vmem>>, vector<1x1xf32>,
    } else {
    }
    %c32_i32 = arith.constant 32 : i32
    %3 = arith.muli %arg0, %c32_i32 : i32
    %4 = tpu.assume_multiple %3, 32 : i32
    %5 = arith.index_cast %4 : i32 to index
    %c0 = arith.constant 0 : index
    %6 = vector.load %arg4[%5, %c0] : memref<96x32xbf16, #tpu.memory_space<vmem>>, vector<32x32xbf16>
    %7 = arith.index_cast %4 : i32 to index
    %c0_1 = arith.constant 0 : index
    %8 = vector.load %arg5[%7, %c0_1] : memref<96x32xbf16, #tpu.memory_space<vmem>>, vector<32x32xbf16>
    %c0_2 = arith.constant 0 : index
    %c0_3 = arith.constant 0 : index
    %9 = vector.load %arg4[%c0_2, %c0_3] : memref<96x32xbf16, #tpu.memory_space<vmem>>, vector<96x32xbf16>
    %cst = arith.constant dense<0.000000e+00> : vector<32x96xf32>
    %10 = tpu.matmul %6, %9, %cst {dimension_numbers = #tpu.dot_dimension_numbers<[1], [1], [0], [0], [0, 0, 1, 0], [], []>} : vector<32x32xbf16>, vector<96x32xbf16>, vector<32x96xf32> -> vector<32x96xf32>
    %c0_4 = arith.constant 0 : index
    %c0_5 = arith.constant 0 : index
    %11 = vector.load %arg5[%c0_4, %c0_5] : memref<96x32xbf16, #tpu.memory_space<vmem>>, vector<96x32xbf16>
    %cst_6 = arith.constant dense<0.000000e+00> : vector<32x96xf32>
    %12 = tpu.matmul %8, %11, %cst_6 {dimension_numbers = #tpu.dot_dimension_numbers<[1], [1], [0], [0], [0, 0, 1, 0], [], []>} : vector<32x32xbf16>, vector<96x32xbf16>, vector<32x96xf32> -> vector<32x96xf32>
    %13 = math.exp %10 : vector<32x96xf32>
    %14 = math.exp %12 : vector<32x96xf32>
    %cst_7 = arith.constant dense<0.000000e+00> : vector<32xf32>
    %15 = vector.multi_reduction <add>, %13, %cst_7 [1] : vector<32x96xf32> to vector<32xf32>
    %16 = vector.shape_cast %15 : vector<32xf32> to vector<32x1xf32>
    %cst_8 = arith.constant dense<0.000000e+00> : vector<32xf32>
    %17 = vector.multi_reduction <add>, %14, %cst_8 [1] : vector<32x96xf32> to vector<32xf32>
    %18 = vector.shape_cast %17 : vector<32xf32> to vector<32x1xf32>
    %19 = arith.subf %10, %12 : vector<32x96xf32>
    %20 = arith.mulf %13, %19 : vector<32x96xf32>
    %cst_9 = arith.constant dense<0.000000e+00> : vector<32xf32>
    %21 = vector.multi_reduction <add>, %20, %cst_9 [1] : vector<32x96xf32> to vector<32xf32>
    %22 = vector.shape_cast %21 : vector<32xf32> to vector<32x1xf32>
    %23 = arith.divf %22, %16 : vector<32x1xf32>
    %24 = math.log %16 : vector<32x1xf32>
    %25 = arith.subf %23, %24 : vector<32x1xf32>
    %26 = math.log %18 : vector<32x1xf32>
    %27 = arith.addf %25, %26 : vector<32x1xf32>
    %28 = arith.index_cast %4 : i32 to index
    %c0_10 = arith.constant 0 : index
    %29 = vector.load %arg1[%28, %c0_10] : memref<96x32xf32, #tpu.memory_space<vmem>>, vector<32x32xf32>
    %30 = arith.index_cast %4 : i32 to index
    %c0_11 = arith.constant 0 : index
    %31 = vector.load %arg2[%30, %c0_11] : memref<96x32xf32, #tpu.memory_space<vmem>>, vector<32x32xf32>
    %cst_12 = arith.constant dense<0xFF800000> : vector<32xf32>
    %32 = vector.multi_reduction <maximumf>, %29, %cst_12 [1] : vector<32x32xf32> to vector<32xf32>
    %33 = vector.shape_cast %32 : vector<32xf32> to vector<32x1xf32>
    %34 = vector.broadcast %33 : vector<32x1xf32> to vector<32x32xf32>
    %35 = arith.subf %29, %34 : vector<32x32xf32>
    %36 = math.exp %35 : vector<32x32xf32>
    %cst_13 = arith.constant dense<0.000000e+00> : vector<32xf32>
    %37 = vector.multi_reduction <add>, %36, %cst_13 [1] : vector<32x32xf32> to vector<32xf32>
    %38 = vector.shape_cast %37 : vector<32xf32> to vector<32x1xf32>
    %cst_14 = arith.constant dense<0xFF800000> : vector<32xf32>
    %39 = vector.multi_reduction <maximumf>, %31, %cst_14 [1] : vector<32x32xf32> to vector<32xf32>
    %40 = vector.shape_cast %39 : vector<32xf32> to vector<32x1xf32>
    %41 = vector.broadcast %40 : vector<32x1xf32> to vector<32x32xf32>
    %42 = arith.subf %31, %41 : vector<32x32xf32>
    %43 = math.exp %42 : vector<32x32xf32>
    %cst_15 = arith.constant dense<0.000000e+00> : vector<32xf32>
    %44 = vector.multi_reduction <add>, %43, %cst_15 [1] : vector<32x32xf32> to vector<32xf32>
    %45 = vector.shape_cast %44 : vector<32xf32> to vector<32x1xf32>
    %46 = arith.subf %29, %31 : vector<32x32xf32>
    %47 = arith.mulf %36, %46 : vector<32x32xf32>
    %cst_16 = arith.constant dense<0.000000e+00> : vector<32xf32>
    %48 = vector.multi_reduction <add>, %47, %cst_16 [1] : vector<32x32xf32> to vector<32xf32>
    %49 = vector.shape_cast %48 : vector<32xf32> to vector<32x1xf32>
    %50 = math.log %38 : vector<32x1xf32>
    %51 = arith.addf %33, %50 : vector<32x1xf32>
    %52 = math.log %45 : vector<32x1xf32>
    %53 = arith.addf %40, %52 : vector<32x1xf32>
    %54 = arith.divf %49, %38 : vector<32x1xf32>
    %55 = arith.subf %54, %51 : vector<32x1xf32>
    %56 = arith.addf %55, %53 : vector<32x1xf32>
    %57 = arith.addf %27, %56 : vector<32x1xf32>
    %c0_17 = arith.constant 0 : index
    %c0_18 = arith.constant 0 : index
    %58 = vector.load %arg3[%c0_17, %c0_18] : memref<1x1xf32, #tpu.memory_space<vmem>>, vector<1x1xf32>
    %59 = vector.shape_cast %57 : vector<32x1xf32> to vector<1x32x1xf32>
    %cst_19 = arith.constant dense<0.000000e+00> : vector<1xf32>
    %60 = vector.multi_reduction <add>, %59, %cst_19 [1, 2] : vector<1x32x1xf32> to vector<1xf32>
    %61 = vector.shape_cast %60 : vector<1xf32> to vector<1x1x1xf32>
    %62 = vector.extract %61[0, 0, 0] : f32 from vector<1x1x1xf32>
    %63 = vector.broadcast %62 : f32 to vector<1x1xf32>
    %64 = arith.addf %58, %63 : vector<1x1xf32>
    %c0_20 = arith.constant 0 : index
    %c0_21 = arith.constant 0 : index
    %65 = vector.load %arg3[%c0_20, %c0_21] : memref<1x1xf32, #tpu.memory_space<vmem>>, vector<1x1xf32>
    tpu.vector_store %arg3[%c0_20, %c0_21], %64 {strides = array<i32>} : memref<1x1xf32, #tpu.memory_space<vmem>>, vector<1x1xf32>,
    return
  }
  func.func @transform_0(%arg0: i32) -> (i32, i32) {
    %c0_i32 = arith.constant 0 : i32
    %c0_i32_0 = arith.constant 0 : i32
    %c0_i32_1 = arith.constant 0 : i32
    return %c0_i32, %c0_i32_0 : i32, i32
  }
  func.func @transform_1(%arg0: i32) -> (i32, i32) {
    %c0_i32 = arith.constant 0 : i32
    %c0_i32_0 = arith.constant 0 : i32
    %c0_i32_1 = arith.constant 0 : i32
    return %c0_i32, %c0_i32_0 : i32, i32
  }
  func.func @transform_2(%arg0: i32) -> (i32, i32) {
    %c0_i32 = arith.constant 0 : i32
    %c0_i32_0 = arith.constant 0 : i32
    %c0_i32_1 = arith.constant 0 : i32
    return %c0_i32, %c0_i32_0 : i32, i32
  }
}

</mosaic_0001>

<bundles_post_ra>
// kernel: tpu_custom_call.1
= control target key start
LH: loop header
LB: loop body
LE: loop exit
PB: predicated region body
PF: predicated region fallthrough
CT: control target
= control target key end

     0   :  { %7 = vsyncpa [#allocation5], 0  ;;  %s1354_s9 = smov 0   ;;  %s1789_s0 = inlined_call_operand.vmem [shape: f32[96,32], index: 0, kind: input, shape index: {}]   ;;  %s1790_s1 = inlined_call_operand.vmem [shape: f32[96,32], index: 1, kind: input, shape index: {}]   ;;  %s1791_s2 = inlined_call_operand.hbm [shape: f32[1,1], index: 2, kind: output, shape index: {}]  }
   0x1 LB: > { %s1360_s10 = sadd.s32 4294967295, %s1335_s9   ;;  %p1002_p0 = scmp.ge.s32.totalorder %s1335_s9, 1  ;;  %s1335_s9 = sphi %s1354_s9, %s13_s9  }
   0x2   : > { %p98_p1 = scmp.lt.s32.totalorder %s1335_s9, 4 }
   0x4   : > { %p99_p2 = pnand %p1002_p0, %p98_p1 }
   0x5   : > { %p1003_p3 = scmp.ne.s32.totalorder (!%p99_p2), %s1360_s10, 0 }
   0x6   : > { %102 = sbr.rel (%p99_p2) target bundleno = 876 (0x36c), region = 28 }
   0xb   : > { %114 = sbr.rel (%p1003_p3) target bundleno = 224 (0xe0), region = 32 }
  0x10   : > { %v1368_v0 = vld [vmem:[%s1789_s0 + $0x10] sm:$0xff]  ;;  %vm139_vm0 = vcmask 261120   ;;  %v1373_v1 = vld [vmem:[%s1789_s0] sm:$0xff]  ;;  %v1378_v2 = vld [vmem:[%s1789_s0 + $0x18] sm:$0xff]  ;;  %vm429_vm1 = vcmask 0   ;;  %vm260_vm2 = vcmask 257024  }
  0x11   : > { %v129_v3 = vmul.f32 %v1368_v0, %v1368_v0  ;;  %v127_v4 = vmul.f32 %v1373_v1, %v1373_v1  ;;  %v130_v5 = vmul.f32 %v1378_v2, %v1378_v2  ;;  %v1389_v6 = vld [vmem:[%s1789_s0 + $0x8] sm:$0xff]  ;;  %v1401_v9 = vld [vmem:[%s1789_s0 + $0x20] sm:$0xff]  ;;  %v1414_v16 = vld [vmem:[%s1789_s0 + $0x38] sm:$0xff] }
  0x12   : > { %v128_v7 = vmul.f32 %v1389_v6, %v1389_v6  ;;  %v1396_v8 = vld [vmem:[%s1789_s0 + $0x28] sm:$0xff]  ;;  %v131_v15 = vmul.f32 %v1401_v9, %v1401_v9  ;;  %v1419_v17 = vld [vmem:[%s1789_s0 + $0x30] sm:$0xff]  ;;  %v134_v20 = vmul.f32 %v1414_v16, %v1414_v16  ;;  %v1435_v23 = vld [vmem:[%s1789_s0 + $0x40] sm:$0xff] }
  0x13   : > { %v146_v10 = vsel %vm139_vm0, %v129_v3, 0.0  ;;  %v140_v11 = vsel %vm139_vm0, %v127_v4, 0.0  ;;  %v149_v12 = vsel %vm139_vm0, %v130_v5, 0.0  ;;  %v132_v14 = vmul.f32 %v1396_v8, %v1396_v8  ;;  %v1430_v22 = vld [vmem:[%s1789_s0 + $0x48] sm:$0xff]  ;;  %v1446_v28 = vld [vmem:[%s1789_s0 + $0x58] sm:$0xff]  ;;  %v1451_v29 = vld [vmem:[%s1789_s0 + $0x50] sm:$0xff] }
  0x14   : > { %147 = vadd.xlane.f32.xlu1 %v146_v10  ;;  %141 = vadd.xlane.f32.xlu0 %v140_v11  ;;  %v143_v13 = vsel %vm139_vm0, %v128_v7, 0.0  ;;  %v152_v19 = vsel %vm139_vm0, %v131_v15, 0.0  ;;  %v133_v21 = vmul.f32 %v1419_v17, %v1419_v17  ;;  %v161_v24 = vsel %vm139_vm0, %v134_v20, 0.0  ;;  %v1462_v34 = vld [vmem:[%s1790_s1 + $0x8] sm:$0xff]  ;;  %v1467_v35 = vld [vmem:[%s1790_s1] sm:$0xff]  ;;  %v1478_v40 = vld [vmem:[%s1790_s1 + $0x18] sm:$0xff] }
  0x15   : > { %v155_v18 = vsel %vm139_vm0, %v132_v14, 0.0  ;;  %v136_v26 = vmul.f32 %v1430_v22, %v1430_v22  ;;  %v135_v27 = vmul.f32 %v1435_v23, %v1435_v23  ;;  %v138_v32 = vmul.f32 %v1446_v28, %v1446_v28  ;;  %v1483_v41 = vld [vmem:[%s1790_s1 + $0x10] sm:$0xff]  ;;  %v1494_v46 = vld [vmem:[%s1790_s1 + $0x28] sm:$0xff]  ;;  %v1499_v47 = vld [vmem:[%s1790_s1 + $0x20] sm:$0xff] }
  0x16   : > { %v158_v25 = vsel %vm139_vm0, %v133_v21, 0.0  ;;  %v137_v33 = vmul.f32 %v1451_v29, %v1451_v29  ;;  %v286_v38 = vmul.f32 %v1462_v34, %v1462_v34  ;;  %v285_v39 = vmul.f32 %v1467_v35, %v1467_v35  ;;  %v1510_v52 = vld [vmem:[%s1790_s1 + $0x38] sm:$0xff]  ;;  %v1515_v53 = vld [vmem:[%s1790_s1 + $0x30] sm:$0xff]  ;;  %v1526_v58 = vld [vmem:[%s1790_s1 + $0x48] sm:$0xff] }
  0x17   : > { %v167_v30 = vsel %vm139_vm0, %v136_v26, 0.0  ;;  %v164_v31 = vsel %vm139_vm0, %v135_v27, 0.0  ;;  %v173_v36 = vsel %vm139_vm0, %v138_v32, 0.0  ;;  %v288_v44 = vmul.f32 %v1478_v40, %v1478_v40  ;;  %v1531_v59 = vld [vmem:[%s1790_s1 + $0x40] sm:$0xff]  ;;  %v1542_v3 = vld [vmem:[%s1790_s1 + $0x58] sm:$0xff]  ;;  %v1547_v4 = vld [vmem:[%s1790_s1 + $0x50] sm:$0xff] }
  0x18   : > { %150 = vadd.xlane.f32.xlu1 %v149_v12  ;;  %144 = vadd.xlane.f32.xlu0 %v143_v13  ;;  %v170_v37 = vsel %vm139_vm0, %v137_v33, 0.0  ;;  %v300_v42 = vsel %vm139_vm0, %v286_v38, 0.0  ;;  %v297_v43 = vsel %vm139_vm0, %v285_v39, 0.0  ;;  %v287_v45 = vmul.f32 %v1483_v41, %v1483_v41 }
  0x19   : > { %v306_v48 = vsel %vm139_vm0, %v288_v44, 0.0  ;;  %v290_v50 = vmul.f32 %v1494_v46, %v1494_v46  ;;  %v289_v51 = vmul.f32 %v1499_v47, %v1499_v47  ;;  %v292_v56 = vmul.f32 %v1510_v52, %v1510_v52 }
  0x1a   : > { %v303_v49 = vsel %vm139_vm0, %v287_v45, 0.0  ;;  %v291_v57 = vmul.f32 %v1515_v53, %v1515_v53  ;;  %v294_v62 = vmul.f32 %v1526_v58, %v1526_v58  ;;  %v293_v63 = vmul.f32 %v1531_v59, %v1531_v59 }
  0x1b   : > { %v312_v54 = vsel %vm139_vm0, %v290_v50, 0.0  ;;  %v309_v55 = vsel %vm139_vm0, %v289_v51, 0.0  ;;  %v318_v60 = vsel %vm139_vm0, %v292_v56, 0.0  ;;  %v296_v10 = vmul.f32 %v1542_v3, %v1542_v3 }
  0x1c   : > { %156 = vadd.xlane.f32.xlu1 %v155_v18  ;;  %153 = vadd.xlane.f32.xlu0 %v152_v19  ;;  %v315_v61 = vsel %vm139_vm0, %v291_v57, 0.0  ;;  %v324_v5 = vsel %vm139_vm0, %v294_v62, 0.0  ;;  %v321_v7 = vsel %vm139_vm0, %v293_v63, 0.0  ;;  %v295_v11 = vmul.f32 %v1547_v4, %v1547_v4 }
  0x1d   : > { %v330_v12 = vsel %vm139_vm0, %v296_v10, 0.0  ;;  %v1337_v14 = vmov 0.0  }
  0x1e   : > { %v327_v13 = vsel %vm139_vm0, %v295_v11, 0.0  ;;  %430 = vst.msk [vmem:[#allocation4] sm:$0x1] %vm429_vm1, %v1337_v14 }
  0x20   : > { %162 = vadd.xlane.f32.xlu1 %v161_v24  ;;  %159 = vadd.xlane.f32.xlu0 %v158_v25 }
  0x24   : > { %168 = vadd.xlane.f32.xlu1 %v167_v30  ;;  %165 = vadd.xlane.f32.xlu0 %v164_v31 }
  0x28   : > { %174 = vadd.xlane.f32.xlu1 %v173_v36  ;;  %171 = vadd.xlane.f32.xlu0 %v170_v37 }
  0x2c   : > { %301 = vadd.xlane.f32.xlu1 %v300_v42  ;;  %298 = vadd.xlane.f32.xlu0 %v297_v43 }
  0x30   : > { %307 = vadd.xlane.f32.xlu1 %v306_v48  ;;  %304 = vadd.xlane.f32.xlu0 %v303_v49 }
  0x34   : > { %313 = vadd.xlane.f32.xlu1 %v312_v54  ;;  %310 = vadd.xlane.f32.xlu0 %v309_v55 }
  0x38   : > { %319 = vadd.xlane.f32.xlu1 %v318_v60  ;;  %316 = vadd.xlane.f32.xlu0 %v315_v61 }
  0x3c   : > { %325 = vadd.xlane.f32.xlu1 %v324_v5  ;;  %322 = vadd.xlane.f32.xlu0 %v321_v7 }
  0x40   : > { %331 = vadd.xlane.f32.xlu1 %v330_v12  ;;  %328 = vadd.xlane.f32.xlu0 %v327_v13 }
  0x9d   : > { %v148_v15 = vpop.xlane.xlu1 %147  ;;  %v142_v18 = vpop.xlane.xlu0 %141 }
  0x9e   : > { %v178_v19 = vmax.f32 %v148_v15, 1e-16  ;;  %v176_v20 = vmax.f32 %v142_v18, 1e-16 }
  0xa0   : > { %1157 = vrsqrt.f32 %v178_v19 }
  0xa1   : > { %1159 = vrsqrt.f32 %v176_v20  ;;  %v151_v21 = vpop.xlane.xlu1 %150  ;;  %v145_v24 = vpop.xlane.xlu0 %144 }
  0xa2   : > { %v179_v25 = vmax.f32 %v151_v21, 1e-16  ;;  %v177_v26 = vmax.f32 %v145_v24, 1e-16 }
  0xa4   : > { %1161 = vrsqrt.f32 %v179_v25 }
  0xa5   : > { %1163 = vrsqrt.f32 %v177_v26  ;;  %v157_v27 = vpop.xlane.xlu1 %156  ;;  %v154_v30 = vpop.xlane.xlu0 %153 }
  0xa6   : > { %v181_v31 = vmax.f32 %v157_v27, 1e-16  ;;  %v180_v32 = vmax.f32 %v154_v30, 1e-16 }
  0xa8   : > { %1165 = vrsqrt.f32 %v181_v31 }
  0xa9   : > { %1167 = vrsqrt.f32 %v180_v32  ;;  %v163_v33 = vpop.xlane.xlu1 %162  ;;  %v160_v36 = vpop.xlane.xlu0 %159 }
  0xaa   : > { %v183_v37 = vmax.f32 %v163_v33, 1e-16  ;;  %v182_v38 = vmax.f32 %v160_v36, 1e-16 }
  0xac   : > { %1169 = vrsqrt.f32 %v183_v37 }
  0xad   : > { %v1158_v39 = vpop.eup %1157  ;;  %1171 = vrsqrt.f32 %v182_v38  ;;  %v169_v42 = vpop.xlane.xlu1 %168 }
  0xae   : > { %v166_v43 = vpop.xlane.xlu0 %165  ;;  %v1160_v44 = vpop.eup %1159  ;;  %v202_v45 = vmul.f32 %v1158_v39, %v1368_v0  ;;  %v185_v48 = vmax.f32 %v169_v42, 1e-16 }
  0xaf   : > { %v184_v49 = vmax.f32 %v166_v43, 1e-16  ;;  %v200_v50 = vmul.f32 %v1160_v44, %v1373_v1 }
  0xb0   : > { %v1057_v51 = vpack.c.bf16 %v202_v45, %v202_v45  ;;  %1173 = vrsqrt.f32 %v185_v48 }
  0xb1   : > { %v1162_v54 = vpop.eup %1161  ;;  %v1055_v55 = vpack.c.bf16 %v200_v50, %v200_v50  ;;  %1175 = vrsqrt.f32 %v184_v49  ;;  %v175_v56 = vpop.xlane.xlu1 %174 }
  0xb2   : > { %v172_v57 = vpop.xlane.xlu0 %171  ;;  %v1164_v60 = vpop.eup %1163  ;;  %263 = vst.msk [vmem:[#allocation2 + $0x8] sm:$0xf] %vm260_vm2, %v1057_v51  ;;  %v203_v61 = vmul.f32 %v1162_v54, %v1378_v2  ;;  %v187_v62 = vmax.f32 %v175_v56, 1e-16 }
  0xb3   : > { %v186_v63 = vmax.f32 %v172_v57, 1e-16  ;;  %261 = vst.msk [vmem:[#allocation2] sm:$0xf] %vm260_vm2, %v1055_v55  ;;  %v201_v0 = vmul.f32 %v1164_v60, %v1389_v6 }
  0xb4   : > { %v1058_v5 = vpack.c.bf16 %v203_v61, %v203_v61  ;;  %1177 = vrsqrt.f32 %v187_v62 }
  0xb5   : > { %v1166_v1 = vpop.eup %1165  ;;  %v1056_v7 = vpack.c.bf16 %v201_v0, %v201_v0  ;;  %1179 = vrsqrt.f32 %v186_v63  ;;  %v302_v10 = vpop.xlane.xlu1 %301 }
  0xb6   : > { %v299_v11 = vpop.xlane.xlu0 %298  ;;  %v1168_v12 = vpop.eup %1167  ;;  %264 = vst.msk [vmem:[#allocation2 + $0xc] sm:$0xf] %vm260_vm2, %v1058_v5  ;;  %v205_v13 = vmul.f32 %v1166_v1, %v1396_v8  ;;  %v334_v14 = vmax.f32 %v302_v10, 1e-16 }
  0xb7   : > { %v333_v2 = vmax.f32 %v299_v11, 1e-16  ;;  %262 = vst.msk [vmem:[#allocation2 + $0x4] sm:$0xf] %vm260_vm2, %v1056_v7  ;;  %v204_v15 = vmul.f32 %v1168_v12, %v1401_v9 }
  0xb8   : > { %v1060_v18 = vpack.c.bf16 %v205_v13, %v205_v13  ;;  %1181 = vrsqrt.f32 %v334_v14 }
  0xb9   : > { %v1170_v6 = vpop.eup %1169  ;;  %v1059_v19 = vpack.c.bf16 %v204_v15, %v204_v15  ;;  %1183 = vrsqrt.f32 %v333_v2  ;;  %v308_v20 = vpop.xlane.xlu1 %307 }
  0xba   : > { %v305_v21 = vpop.xlane.xlu0 %304  ;;  %v1172_v24 = vpop.eup %1171  ;;  %266 = vst.msk [vmem:[#allocation2 + $0x14] sm:$0xf] %vm260_vm2, %v1060_v18  ;;  %v207_v25 = vmul.f32 %v1170_v6, %v1414_v16  ;;  %v336_v26 = vmax.f32 %v308_v20, 1e-16 }
  0xbb   : > { %v335_v8 = vmax.f32 %v305_v21, 1e-16  ;;  %265 = vst.msk [vmem:[#allocation2 + $0x10] sm:$0xf] %vm260_vm2, %v1059_v19  ;;  %v206_v27 = vmul.f32 %v1172_v24, %v1419_v17 }
  0xbc   : > { %v1062_v30 = vpack.c.bf16 %v207_v25, %v207_v25  ;;  %1185 = vrsqrt.f32 %v336_v26 }
  0xbd   : > { %v1174_v9 = vpop.eup %1173  ;;  %v1061_v31 = vpack.c.bf16 %v206_v27, %v206_v27  ;;  %1187 = vrsqrt.f32 %v335_v8  ;;  %v314_v32 = vpop.xlane.xlu1 %313 }
  0xbe   : > { %v311_v33 = vpop.xlane.xlu0 %310  ;;  %v1176_v36 = vpop.eup %1175  ;;  %268 = vst.msk [vmem:[#allocation2 + $0x1c] sm:$0xf] %vm260_vm2, %v1062_v30  ;;  %v209_v37 = vmul.f32 %v1174_v9, %v1430_v22  ;;  %v338_v38 = vmax.f32 %v314_v32, 1e-16 }
  0xbf   : > { %v337_v16 = vmax.f32 %v311_v33, 1e-16  ;;  %267 = vst.msk [vmem:[#allocation2 + $0x18] sm:$0xf] %vm260_vm2, %v1061_v31  ;;  %v208_v39 = vmul.f32 %v1176_v36, %v1435_v23 }
  0xc0   : > { %v1064_v42 = vpack.c.bf16 %v209_v37, %v209_v37  ;;  %1189 = vrsqrt.f32 %v338_v38 }
  0xc1   : > { %v1178_v17 = vpop.eup %1177  ;;  %v1063_v43 = vpack.c.bf16 %v208_v39, %v208_v39  ;;  %1191 = vrsqrt.f32 %v337_v16  ;;  %v320_v44 = vpop.xlane.xlu1 %319 }
  0xc2   : > { %v317_v45 = vpop.xlane.xlu0 %316  ;;  %v1180_v48 = vpop.eup %1179  ;;  %270 = vst.msk [vmem:[#allocation2 + $0x24] sm:$0xf] %vm260_vm2, %v1064_v42  ;;  %v211_v49 = vmul.f32 %v1178_v17, %v1446_v28  ;;  %v340_v50 = vmax.f32 %v320_v44, 1e-16 }
  0xc3   : > { %v339_v22 = vmax.f32 %v317_v45, 1e-16  ;;  %269 = vst.msk [vmem:[#allocation2 + $0x20] sm:$0xf] %vm260_vm2, %v1063_v43  ;;  %v210_v51 = vmul.f32 %v1180_v48, %v1451_v29 }
  0xc4   : > { %v1066_v54 = vpack.c.bf16 %v211_v49, %v211_v49  ;;  %1193 = vrsqrt.f32 %v340_v50 }
  0xc5   : > { %v1182_v23 = vpop.eup %1181  ;;  %v1065_v55 = vpack.c.bf16 %v210_v51, %v210_v51  ;;  %1195 = vrsqrt.f32 %v339_v22  ;;  %v326_v56 = vpop.xlane.xlu1 %325 }
  0xc6   : > { %v323_v57 = vpop.xlane.xlu0 %322  ;;  %v1184_v60 = vpop.eup %1183  ;;  %272 = vst.msk [vmem:[#allocation2 + $0x2c] sm:$0xf] %vm260_vm2, %v1066_v54  ;;  %v358_v61 = vmul.f32 %v1182_v23, %v1462_v34  ;;  %v342_v62 = vmax.f32 %v326_v56, 1e-16 }
  0xc7   : > { %v341_v28 = vmax.f32 %v323_v57, 1e-16  ;;  %271 = vst.msk [vmem:[#allocation2 + $0x28] sm:$0xf] %vm260_vm2, %v1065_v55  ;;  %v357_v63 = vmul.f32 %v1184_v60, %v1467_v35 }
  0xc8   : > { %v1068_v0 = vpack.c.bf16 %v358_v61, %v358_v61  ;;  %1197 = vrsqrt.f32 %v342_v62 }
  0xc9   : > { %v1186_v29 = vpop.eup %1185  ;;  %v1067_v5 = vpack.c.bf16 %v357_v63, %v357_v63  ;;  %1199 = vrsqrt.f32 %v341_v28  ;;  %v332_v1 = vpop.xlane.xlu1 %331 }
  0xca   : > { %v329_v7 = vpop.xlane.xlu0 %328  ;;  %v1188_v10 = vpop.eup %1187  ;;  %418 = vst.msk [vmem:[#allocation3 + $0x4] sm:$0xf] %vm260_vm2, %v1068_v0  ;;  %v360_v11 = vmul.f32 %v1186_v29, %v1478_v40  ;;  %v344_v12 = vmax.f32 %v332_v1, 1e-16 }
  0xcb   : > { %v343_v34 = vmax.f32 %v329_v7, 1e-16  ;;  %417 = vst.msk [vmem:[#allocation3] sm:$0xf] %vm260_vm2, %v1067_v5  ;;  %v359_v13 = vmul.f32 %v1188_v10, %v1483_v41 }
  0xcc   : > { %v1070_v14 = vpack.c.bf16 %v360_v11, %v360_v11  ;;  %1201 = vrsqrt.f32 %v344_v12 }
  0xcd   : > { %v1190_v35 = vpop.eup %1189  ;;  %v1069_v2 = vpack.c.bf16 %v359_v13, %v359_v13  ;;  %1203 = vrsqrt.f32 %v343_v34 }
  0xce   : > { %v1192_v15 = vpop.eup %1191  ;;  %420 = vst.msk [vmem:[#allocation3 + $0xc] sm:$0xf] %vm260_vm2, %v1070_v14  ;;  %v362_v18 = vmul.f32 %v1190_v35, %v1494_v46 }
  0xcf   : > { %419 = vst.msk [vmem:[#allocation3 + $0x8] sm:$0xf] %vm260_vm2, %v1069_v2  ;;  %v361_v40 = vmul.f32 %v1192_v15, %v1499_v47 }
  0xd0   : > { %v1072_v6 = vpack.c.bf16 %v362_v18, %v362_v18 }
  0xd1   : > { %v1194_v19 = vpop.eup %1193  ;;  %v1071_v20 = vpack.c.bf16 %v361_v40, %v361_v40 }
  0xd2   : > { %v1196_v21 = vpop.eup %1195  ;;  %422 = vst.msk [vmem:[#allocation3 + $0x14] sm:$0xf] %vm260_vm2, %v1072_v6  ;;  %v364_v41 = vmul.f32 %v1194_v19, %v1510_v52 }
  0xd3   : > { %421 = vst.msk [vmem:[#allocation3 + $0x10] sm:$0xf] %vm260_vm2, %v1071_v20  ;;  %v363_v24 = vmul.f32 %v1196_v21, %v1515_v53 }
  0xd4   : > { %v1074_v25 = vpack.c.bf16 %v364_v41, %v364_v41 }
  0xd5   : > { %v1198_v26 = vpop.eup %1197  ;;  %v1073_v8 = vpack.c.bf16 %v363_v24, %v363_v24 }
  0xd6   : > { %v1200_v46 = vpop.eup %1199  ;;  %424 = vst.msk [vmem:[#allocation3 + $0x1c] sm:$0xf] %vm260_vm2, %v1074_v25  ;;  %v366_v47 = vmul.f32 %v1198_v26, %v1526_v58 }
  0xd7   : > { %423 = vst.msk [vmem:[#allocation3 + $0x18] sm:$0xf] %vm260_vm2, %v1073_v8  ;;  %v365_v27 = vmul.f32 %v1200_v46, %v1531_v59 }
  0xd8   : > { %v1076_v30 = vpack.c.bf16 %v366_v47, %v366_v47 }
  0xd9   : > { %v1202_v9 = vpop.eup %1201  ;;  %v1075_v31 = vpack.c.bf16 %v365_v27, %v365_v27 }
  0xda   : > { %v1204_v52 = vpop.eup %1203  ;;  %426 = vst.msk [vmem:[#allocation3 + $0x24] sm:$0xf] %vm260_vm2, %v1076_v30  ;;  %v368_v53 = vmul.f32 %v1202_v9, %v1542_v3 }
  0xdb   : > { %425 = vst.msk [vmem:[#allocation3 + $0x20] sm:$0xf] %vm260_vm2, %v1075_v31  ;;  %v367_v32 = vmul.f32 %v1204_v52, %v1547_v4 }
  0xdc   : > { %v1078_v33 = vpack.c.bf16 %v368_v53, %v368_v53 }
  0xdd   : > { %v1077_v36 = vpack.c.bf16 %v367_v32, %v367_v32 }
  0xde   : > { %428 = vst.msk [vmem:[#allocation3 + $0x2c] sm:$0xf] %vm260_vm2, %v1078_v33 }
  0xdf   : > { %427 = vst.msk [vmem:[#allocation3 + $0x28] sm:$0xf] %vm260_vm2, %v1077_v36 }
  0xe0 PF: > { %v1205_v58 = vld [vmem:[#allocation2 + $0x28] sm:$0xff]   ;;  %vm498_vm3 = vcmask 261120   ;;  %s1028_s5 = sshll.u32 %s1360_s10, 5  ;;  %v1207_v4 = vld [vmem:[#allocation2 + $0x20] sm:$0xff]   ;;  %v1209_v51 = vld [vmem:[#allocation2 + $0x18] sm:$0xff]   ;;  %vm713_vm4 = vcmask 785408  }
  0xe1   : > { %1127 = vmatprep.subr.msk.bf16.mxu0 %vm498_vm3, %v1205_v58  ;;  %v521_v3 = vsel %vm498_vm3, %v1205_v58, 0  ;;  %s790_s8 = scalar_lea.vmem %s1789_s0, %s1028_s5  ;;  %s1614_s13 = scalar_lea.vmem %s1790_s1, %s1028_s5  ;;  %v518_v50 = vsel %vm498_vm3, %v1207_v4, 0  ;;  %v1210_v57 = vld [vmem:[#allocation3 + $0x18] sm:$0xff]   ;;  %v1211_v28 = vld [vmem:[#allocation2 + $0x10] sm:$0xff]   ;;  %v515_v63 = vsel %vm498_vm3, %v1209_v51, 0  ;;  %v1212_v0 = vld [vmem:[#allocation3 + $0x10] sm:$0xff]  }
  0xe2   : > { %1096 = vmatpush3.bf16.xpose.msra.mxu0 %v521_v3  ;;  %v1618_v38 = vld [vmem:[%s790_s8] sm:$0xff]  ;;  %v1620_v16 = vld [vmem:[%s790_s8 + $0x10] sm:$0xff]  ;;  %v1622_v39 = vld [vmem:[%s790_s8 + $0x8] sm:$0xff]  ;;  %s432_s14 = sshra.s32 %s1028_s5, 3  ;;  %v640_v5 = vsel %vm498_vm3, %v1210_v57, 0  ;;  %v512_v7 = vsel %vm498_vm3, %v1211_v28, 0 }
  0xe3   : > { %v800_v42 = vsel %vm498_vm3, %v1618_v38, -inf  ;;  %v806_v17 = vsel %vm498_vm3, %v1620_v16, -inf  ;;  %1128 = vmatprep.subr.msk.bf16.mxu0 %vm498_vm3, %v1207_v4  ;;  %v1208_v43 = vld [vmem:[#allocation3 + $0x20] sm:$0xff]   ;;  %v1630_v44 = vld [vmem:[%s1614_s13] sm:$0xff]  ;;  %v803_v45 = vsel %vm498_vm3, %v1622_v39, -inf  ;;  %v1638_v49 = vld [vmem:[%s1614_s13 + $0x8] sm:$0xff] }
  0xe4   : > { %801 = vmax.xlane.f32.xlu0 %v800_v42  ;;  %807 = vmax.xlane.f32.xlu1 %v806_v17  ;;  %v836_v48 = vsel %vm498_vm3, %v1630_v44, -inf  ;;  %v1641_v22 = vld [vmem:[%s790_s8 + $0x18] sm:$0xff]  ;;  %s1643_s15 = sshll.u32 %s432_s14, 2  ;;  %v643_v54 = vsel %vm498_vm3, %v1208_v43, 0  ;;  %v1647_v23 = vld [vmem:[%s1614_s13 + $0x10] sm:$0xff]  ;;  %v839_v55 = vsel %vm498_vm3, %v1638_v49, -inf }
  0xe5   : > { %v809_v56 = vsel %vm498_vm3, %v1641_v22, -inf  ;;  %v1654_v60 = vld [vmem:[%s1614_s13 + $0x18] sm:$0xff]  ;;  %v842_v61 = vsel %vm498_vm3, %v1647_v23, -inf  ;;  %s435_s16 = scalar_lea.vmem [#allocation2], %s1643_s15  ;;  %s441_s17 = scalar_lea.vmem [#allocation3], %s1643_s15  ;;  %v1213_v10 = vld [vmem:[#allocation2 + $0x8] sm:$0xff]  }
  0xe6   : > { %v1206_v59 = vld [vmem:[#allocation3 + $0x28] sm:$0xff]   ;;  %v845_v62 = vsel %vm498_vm3, %v1654_v60, -inf  ;;  %v1217_v29 = vld [vmem:[%s435_s16] sm:$0xff]   ;;  %v637_v11 = vsel %vm498_vm3, %v1212_v0, 0  ;;  %v509_v34 = vsel %vm498_vm3, %v1213_v10, 0  ;;  %v1216_v35 = vld [vmem:[#allocation3] sm:$0xff]  }
  0xe7   : > { %1133 = vmatprep.subr.msk.bf16.mxu1 %vm498_vm3, %v1206_v59  ;;  %v646_v37 = vsel %vm498_vm3, %v1206_v59, 0  ;;  %v1218_v1 = vld [vmem:[%s441_s17] sm:$0xff]   ;;  %1107 = vmatprep.mubr.msk.bf16.mxu0 %vm498_vm3, %v1217_v29  ;;  %v1214_v12 = vld [vmem:[#allocation3 + $0x8] sm:$0xff]   ;;  %v631_v15 = vsel %vm498_vm3, %v1216_v35, 0  ;;  %v1219_v18 = vld [vmem:[%s435_s16 + $0x8] sm:$0xff]   ;;  %vm937_vm5 = vcmask 7168  }
  0xe8   : > { %1112 = vmatpush3.bf16.xpose.msra.mxu1 %v646_v37  ;;  %804 = vmax.xlane.f32.xlu0 %v803_v45  ;;  %v1215_v13 = vld [vmem:[#allocation2] sm:$0xff]   ;;  %v634_v14 = vsel %vm498_vm3, %v1214_v12, 0  ;;  %v1220_v40 = vld [vmem:[%s441_s17 + $0x8] sm:$0xff]   ;;  %s1338_s18 = smov [#allocation4]   ;;  %vm956_vm6 = vcmask 0   ;;  %p1145_p4 = scmp.eq.s32.totalorder %s1360_s10, 2 }
  0xe9   : > { %1134 = vmatprep.subr.msk.bf16.mxu1 %vm498_vm3, %v1208_v43  ;;  %837 = vmax.xlane.f32.xlu1 %v836_v48  ;;  %v506_v2 = vsel %vm498_vm3, %v1215_v13, 0  ;;  %s965_s19 = sshll.u32 %s1338_s18, 4  ;;  %s966_s19 = int_to_ptr.vmem [resolvable:$true] %s965_s19 }
  0xea   : > { %1098 = vmatpush3.bf16.xpose.msra.mxu0 %v518_v50  ;;  %1123 = vmatprep.mubr.msk.bf16.mxu1 %vm498_vm3, %v1218_v1  ;;  %s1301_s21 = scalar_lea.vmem %s966_s19, 16  ;;  %s1307_s22 = scalar_lea.vmem %s966_s19, 32 }
  0xeb   : > { %1129 = vmatprep.subr.msk.bf16.mxu0 %vm498_vm3, %v1209_v51  ;;  %p1302_p5 = scmp.ne.s32.totalorder %s966_s19, %s1301_s21  ;;  %p1308_p8 = scmp.lt.s32.totalorder %s966_s19, %s966_s19 }
  0xec   : > { %840 = vmax.xlane.f32.xlu0 %v839_v55  ;;  %p1309_p9 = scmp.lt.s32.totalorder %s1307_s22, %s1301_s21 }
  0xed   : > { %810 = vmax.xlane.f32.xlu1 %v809_v56  ;;  %p1303_p6 = pnand %p1302_p5, %p1145_p4 }
  0xee   : > { %p1310_p10 = por %p1309_p9, %p1308_p8 }
  0xef   : > { %p1304_p7 = pneg %p1303_p6 }
  0xf0   : > { %1114 = vmatpush3.bf16.xpose.msra.mxu1 %v643_v54  ;;  %843 = vmax.xlane.f32.xlu0 %v842_v61 }
  0xf1   : > { %1135 = vmatprep.subr.msk.bf16.mxu1 %vm498_vm3, %v1210_v57  ;;  %846 = vmax.xlane.f32.xlu1 %v845_v62  ;;  %p1311_p11 = pnand %p1310_p10, %p1304_p7 }
  0xf2   : > { %1100 = vmatpush3.bf16.xpose.msra.mxu0 %v515_v63 }
  0xf3   : > { %1130 = vmatprep.subr.msk.bf16.mxu0 %vm498_vm3, %v1211_v28 }
  0xf8   : > { %1116 = vmatpush3.bf16.xpose.msra.mxu1 %v640_v5 }
  0xf9   : > { %1136 = vmatprep.subr.msk.bf16.mxu1 %vm498_vm3, %v1212_v0 }
  0xfa   : > { %1102 = vmatpush3.bf16.xpose.msra.mxu0 %v512_v7 }
  0xfb   : > { %1131 = vmatprep.subr.msk.bf16.mxu0 %vm498_vm3, %v1213_v10 }
 0x100   : > { %1118 = vmatpush3.bf16.xpose.msra.mxu1 %v637_v11 }
 0x101   : > { %1137 = vmatprep.subr.msk.bf16.mxu1 %vm498_vm3, %v1214_v12 }
 0x102   : > { %1104 = vmatpush3.bf16.xpose.msra.mxu0 %v509_v34 }
 0x103   : > { %1132 = vmatprep.subr.msk.bf16.mxu0 %vm498_vm3, %v1215_v13 }
 0x108   : > { %1120 = vmatpush3.bf16.xpose.msra.mxu1 %v634_v14 }
 0x109   : > { %1138 = vmatprep.subr.msk.bf16.mxu1 %vm498_vm3, %v1216_v35 }
 0x10a   : > { %1106 = vmatpush3.bf16.xpose.msra.mxu0 %v506_v2 }
 0x110   : > { %1122 = vmatpush3.bf16.xpose.msra.mxu1 %v631_v15 }
 0x111   : > { %1108 = vmatmul.mubr.msk.bf16.vlgmr.msra.gmra.mxu0 %vm498_vm3, %v1219_v18 }
 0x117   : > { %1124 = vmatmul.mubr.msk.bf16.vlgmr.msra.gmra.mxu1 %vm498_vm3, %v1220_v40 }
 0x16d   : > { %v1686_v6 = vpop.xlane.xlu0 %801  ;;  %v1688_v19 = vpop.xlane.xlu1 %807 }
 0x16e   : > { %v812_v20 = vsub.f32 %v1618_v38, %v1686_v6  ;;  %v814_v21 = vsub.f32 %v1620_v16, %v1688_v19 }
 0x170   : > { %v816_v41 = vmul.f32 1.442695, %v812_v20  ;;  %v820_v24 = vmul.f32 1.442695, %v814_v21 }
 0x171   : > { %v1694_v25 = vpop.xlane.xlu0 %804 }
 0x172   : > { %v1696_v26 = vpop.xlane.xlu1 %837  ;;  %1221 = vpow2.f32 %v816_v41  ;;  %v813_v8 = vsub.f32 %v1622_v39, %v1694_v25 }
 0x173   : > { %v848_v46 = vsub.f32 %v1630_v44, %v1696_v26  ;;  %1223 = vpow2.f32 %v820_v24 }
 0x174   : > { %v818_v47 = vmul.f32 1.442695, %v813_v8 }
 0x175   : > { %v852_v27 = vmul.f32 1.442695, %v848_v46  ;;  %v1702_v30 = vpop.xlane.xlu0 %840 }
 0x176   : > { %v1704_v9 = vpop.xlane.xlu1 %810  ;;  %1225 = vpow2.f32 %v818_v47  ;;  %v849_v31 = vsub.f32 %v1638_v49, %v1702_v30 }
 0x177   : > { %v815_v52 = vsub.f32 %v1641_v22, %v1704_v9  ;;  %1227 = vpow2.f32 %v852_v27 }
 0x178   : > { %v854_v53 = vmul.f32 1.442695, %v849_v31 }
 0x179   : > { %v822_v32 = vmul.f32 1.442695, %v815_v52  ;;  %v1710_v33 = vpop.xlane.xlu0 %843  ;;  %v872_v52 = vsub.f32 %v1618_v38, %v1630_v44 }
 0x17a   : > { %v1712_v36 = vpop.xlane.xlu1 %846  ;;  %1229 = vpow2.f32 %v854_v53  ;;  %v850_v58 = vsub.f32 %v1647_v23, %v1710_v33 }
 0x17b   : > { %v851_v59 = vsub.f32 %v1654_v60, %v1712_v36  ;;  %1231 = vpow2.f32 %v822_v32 }
 0x17c   : > { %v856_v3 = vmul.f32 1.442695, %v850_v58 }
 0x17d   : > { %v858_v4 = vmul.f32 1.442695, %v851_v59 }
 0x17e   : > { %1233 = vpow2.f32 %v856_v3 }
 0x17f   : > { %v1718_v37 = vpop.eup %1221  ;;  %1235 = vpow2.f32 %v858_v4 }
 0x180   : > { %v1720_v42 = vpop.eup %1223  ;;  %v824_v17 = vsel %vm498_vm3, %v1718_v37, 0.0  ;;  %v876_v3 = vmul.f32 %v1718_v37, %v872_v52  ;;  %v874_v37 = vsub.f32 %v1620_v16, %v1647_v23  ;;  %v875_v16 = vsub.f32 %v1641_v22, %v1654_v60 }
 0x181   : > { %825 = vadd.xlane.f32.xlu0 %v824_v17  ;;  %v830_v43 = vsel %vm498_vm3, %v1720_v42, 0.0 }
 0x182   : > { %v880_v38 = vsel %vm498_vm3, %v876_v3, 0.0 }
 0x183   : > { %v1726_v45 = vpop.eup %1225 }
 0x184   : > { %v1228_v48 = vpop.eup %1227  ;;  %v827_v50 = vsel %vm498_vm3, %v1726_v45, 0.0 }
 0x185   : > { %831 = vadd.xlane.f32.xlu0 %v830_v43  ;;  %828 = vadd.xlane.f32.xlu1 %v827_v50  ;;  %v860_v51 = vsel %vm498_vm3, %v1228_v48, 0.0  ;;  %v873_v43 = vsub.f32 %v1622_v39, %v1638_v49 }
 0x187   : > { %v1230_v54 = vpop.eup %1229 }
 0x188   : > { %v1731_v55 = vpop.eup %1231  ;;  %v863_v56 = vsel %vm498_vm3, %v1230_v54, 0.0  ;;  %v877_v54 = vmul.f32 %v1726_v45, %v873_v43 }
 0x189   : > { %861 = vadd.xlane.f32.xlu1 %v860_v51  ;;  %864 = vadd.xlane.f32.xlu0 %v863_v56  ;;  %v833_v57 = vsel %vm498_vm3, %v1731_v55, 0.0 }
 0x18a   : > { %v883_v49 = vsel %vm498_vm3, %v877_v54, 0.0 }
 0x18b   : > { %v1234_v61 = vpop.eup %1233 }
 0x18c   : > { %v1236_v62 = vpop.eup %1235  ;;  %v866_v28 = vsel %vm498_vm3, %v1234_v61, 0.0  ;;  %v878_v61 = vmul.f32 %v1720_v42, %v874_v37  ;;  %v879_v42 = vmul.f32 %v1731_v55, %v875_v16 }
 0x18d   : > { %834 = vadd.xlane.f32.xlu0 %v833_v57  ;;  %867 = vadd.xlane.f32.xlu1 %v866_v28  ;;  %v869_v63 = vsel %vm498_vm3, %v1236_v62, 0.0 }
 0x18e   : > { %v886_v45 = vsel %vm498_vm3, %v878_v61, 0.0 }
 0x191   : > { %870 = vadd.xlane.f32.xlu0 %v869_v63 }
 0x1d1   : > { %v1109_v0 = vpop.f32.mrf.mxu0 }
 0x1d2   : > { %v701_v29 = vmul.f32 1.442695, %v1109_v0 }
 0x1d3   : > { %v557_v7 = vpop.f32.mrf.mxu0 }
 0x1d4   : > { %1237 = vpow2.f32 %v701_v29  ;;  %v697_v10 = vmul.f32 1.442695, %v557_v7 }
 0x1d5   : > { %v1110_v34 = vpop.f32.mrf.mxu0 }
 0x1d6   : > { %v703_v2 = vmul.f32 1.442695, %v1110_v34 }
 0x1d7   : > { %v1125_v5 = vpop.f32.mrf.mxu1  ;;  %v560_v35 = vpop.f32.mrf.mxu0 }
 0x1d8   : > { %v709_v1 = vmul.f32 1.442695, %v1125_v5  ;;  %v699_v15 = vmul.f32 1.442695, %v560_v35  ;;  %v740_v50 = vsub.f32 %v1109_v0, %v1125_v5  ;;  %v889_v5 = vsel %vm498_vm3, %v879_v42, 0.0 }
 0x1d9   : > { %v682_v11 = vpop.f32.mrf.mxu1 }
 0x1da   : > { %1239 = vpow2.f32 %v709_v1  ;;  %v705_v12 = vmul.f32 1.442695, %v682_v11  ;;  %v738_v4 = vsub.f32 %v557_v7, %v682_v11 }
 0x1db   : > { %1241 = vpow2.f32 %v697_v10  ;;  %v1126_v13 = vpop.f32.mrf.mxu1 }
 0x1dc   : > { %v711_v14 = vmul.f32 1.442695, %v1126_v13  ;;  %1243 = vpow2.f32 %v705_v12  ;;  %v741_v39 = vsub.f32 %v1110_v34, %v1126_v13 }
 0x1dd   : > { %v685_v18 = vpop.f32.mrf.mxu1 }
 0x1de   : > { %1245 = vpow2.f32 %v711_v14  ;;  %v707_v40 = vmul.f32 1.442695, %v685_v18  ;;  %v739_v62 = vsub.f32 %v560_v35, %v685_v18 }
 0x1df   : > { %1247 = vpow2.f32 %v703_v2 }
 0x1e0   : > { %1249 = vpow2.f32 %v699_v15 }
 0x1e1   : > { %v1238_v20 = vpop.eup %1237  ;;  %1251 = vpow2.f32 %v707_v40 }
 0x1e2   : > { %v720_v41 = vsel %vm713_vm4, %v1238_v20, 0.0  ;;  %v744_v57 = vmul.f32 %v1238_v20, %v740_v50 }
 0x1e3   : > { %721 = vadd.xlane.f32.xlu1 %v720_v41 }
 0x1e4   : > { %v752_v28 = vsel %vm713_vm4, %v744_v57, 0.0 }
 0x1e7   : > { %v1240_v21 = vpop.eup %1239 }
 0x1e8   : > { %v1242_v24 = vpop.eup %1241  ;;  %v732_v46 = vsel %vm713_vm4, %v1240_v21, 0.0 }
 0x1e9   : > { %v714_v8 = vsel %vm713_vm4, %v1242_v24, 0.0  ;;  %v1244_v47 = vpop.eup %1243  ;;  %733 = vadd.xlane.f32.xlu1 %v732_v46  ;;  %v742_v44 = vmul.f32 %v1242_v24, %v738_v4 }
 0x1ea   : > { %715 = vadd.xlane.f32.xlu0 %v714_v8  ;;  %v726_v31 = vsel %vm713_vm4, %v1244_v47, 0.0 }
 0x1eb   : > { %v1246_v27 = vpop.eup %1245  ;;  %v746_v56 = vsel %vm713_vm4, %v742_v44, 0.0 }
 0x1ec   : > { %v1248_v53 = vpop.eup %1247  ;;  %v735_v32 = vsel %vm713_vm4, %v1246_v27, 0.0 }
 0x1ed   : > { %v1250_v58 = vpop.eup %1249  ;;  %736 = vadd.xlane.f32.xlu1 %v735_v32  ;;  %v723_v59 = vsel %vm713_vm4, %v1248_v53, 0.0  ;;  %v745_v63 = vmul.f32 %v1248_v53, %v741_v39 }
 0x1ee   : > { %727 = vadd.xlane.f32.xlu0 %v726_v31  ;;  %v717_v17 = vsel %vm713_vm4, %v1250_v58, 0.0  ;;  %v1252_v48 = vpop.eup %1251  ;;  %v743_v0 = vmul.f32 %v1250_v58, %v739_v62 }
 0x1ef   : > { %v729_v51 = vsel %vm713_vm4, %v1252_v48, 0.0  ;;  %v755_v23 = vsel %vm713_vm4, %v745_v63, 0.0 }
 0x1f0   : > { %v749_v29 = vsel %vm713_vm4, %v743_v0, 0.0 }
 0x1f1   : > { %718 = vadd.xlane.f32.xlu1 %v717_v17 }
 0x1f2   : > { %724 = vadd.xlane.f32.xlu0 %v723_v59 }
 0x1f5   : > { %730 = vadd.xlane.f32.xlu1 %v729_v51 }
 0x1f6   : > { %881 = vadd.xlane.f32.xlu0 %v880_v38 }
 0x1f9   : > { %884 = vadd.xlane.f32.xlu1 %v883_v49 }
 0x1fa   : > { %747 = vadd.xlane.f32.xlu0 %v746_v56 }
 0x1fd   : > { %887 = vadd.xlane.f32.xlu1 %v886_v45 }
 0x1fe   : > { %753 = vadd.xlane.f32.xlu0 %v752_v28 }
 0x201   : > { %750 = vadd.xlane.f32.xlu1 %v749_v29 }
 0x202   : > { %756 = vadd.xlane.f32.xlu0 %v755_v23 }
 0x205   : > { %890 = vadd.xlane.f32.xlu1 %v889_v5 }
 0x20a   : > { %v826_v1 = vpop.xlane.xlu0 %825 }
 0x20b   : > { %1253 = vlog2.f32 %v826_v1 }
 0x20c   : > { %1255 = vrcp.f32 %v826_v1 }
 0x20e   : > { %v832_v7 = vpop.xlane.xlu0 %831  ;;  %v829_v10 = vpop.xlane.xlu1 %828 }
 0x20f   : > { %1257 = vlog2.f32 %v829_v10 }
 0x210   : > { %1259 = vrcp.f32 %v829_v10 }
 0x211   : > { %1261 = vlog2.f32 %v832_v7 }
 0x212   : > { %v865_v11 = vpop.xlane.xlu0 %864  ;;  %v862_v12 = vpop.xlane.xlu1 %861  ;;  %1263 = vrcp.f32 %v832_v7 }
 0x213   : > { %1265 = vlog2.f32 %v862_v12 }
 0x214   : > { %1267 = vlog2.f32 %v865_v11 }
 0x216   : > { %v835_v34 = vpop.xlane.xlu0 %834  ;;  %v868_v22 = vpop.xlane.xlu1 %867 }
 0x217   : > { %1269 = vlog2.f32 %v868_v22 }
 0x218   : > { %1271 = vlog2.f32 %v835_v34  ;;  %v1254_v2 = vpop.eup %1253 }
 0x219   : > { %v1256_v18 = vpop.eup %1255  ;;  %v893_v3 = vmul.f32 0.6931472, %v1254_v2 }
 0x21a   : > { %v871_v60 = vpop.xlane.xlu0 %870 }
 0x21b   : > { %v900_v39 = vadd.f32 %v893_v3, %v1686_v6 }
 0x21c   : > { %v1258_v40 = vpop.eup %1257 }
 0x21d   : > { %v1260_v21 = vpop.eup %1259  ;;  %v895_v50 = vmul.f32 0.6931472, %v1258_v40 }
 0x21e   : > { %v1262_v41 = vpop.eup %1261 }
 0x21f   : > { %v1264_v8 = vpop.eup %1263  ;;  %v897_v38 = vmul.f32 0.6931472, %v1262_v41  ;;  %v901_v7 = vadd.f32 %v895_v50, %v1694_v25 }
 0x220   : > { %v1266_v46 = vpop.eup %1265 }
 0x221   : > { %v1268_v27 = vpop.eup %1267  ;;  %v905_v57 = vmul.f32 0.6931472, %v1266_v46  ;;  %v902_v23 = vadd.f32 %v897_v38, %v1688_v19 }
 0x222   : > { %v907_v5 = vmul.f32 0.6931472, %v1268_v27 }
 0x223   : > { %v912_v6 = vadd.f32 %v905_v57, %v1696_v26 }
 0x224   : > { %v1270_v31 = vpop.eup %1269  ;;  %v913_v25 = vadd.f32 %v907_v5, %v1702_v30 }
 0x225   : > { %v1272_v53 = vpop.eup %1271  ;;  %v909_v61 = vmul.f32 0.6931472, %v1270_v31 }
 0x26c   : > { %v722_v13 = vpop.xlane.xlu1 %721 }
 0x272   : > { %v734_v14 = vpop.xlane.xlu1 %733 }
 0x273   : > { %v716_v55 = vpop.xlane.xlu0 %715 }
 0x274   : > { %1273 = vrcp.f32 %v716_v55 }
 0x275   : > { %1275 = vlog2.f32 %v716_v55 }
 0x276   : > { %1277 = vlog2.f32 %v871_v60  ;;  %v737_v15 = vpop.xlane.xlu1 %736  ;;  %v914_v60 = vadd.f32 %v909_v61, %v1710_v33 }
 0x277   : > { %v728_v35 = vpop.xlane.xlu0 %727 }
 0x278   : > { %1279 = vlog2.f32 %v728_v35 }
 0x279   : > { %1281 = vrcp.f32 %v722_v13 }
 0x27a   : > { %1283 = vlog2.f32 %v722_v13  ;;  %v719_v24 = vpop.xlane.xlu1 %718  ;;  %v899_v13 = vmul.f32 0.6931472, %v1272_v53 }
 0x27b   : > { %v725_v20 = vpop.xlane.xlu0 %724  ;;  %1285 = vlog2.f32 %v734_v14 }
 0x27c   : > { %1287 = vrcp.f32 %v725_v20 }
 0x27d   : > { %1289 = vlog2.f32 %v725_v20 }
 0x27e   : > { %1291 = vlog2.f32 %v719_v24  ;;  %v731_v52 = vpop.xlane.xlu1 %730 }
 0x27f   : > { %v882_v47 = vpop.xlane.xlu0 %881  ;;  %1293 = vrcp.f32 %v719_v24 }
 0x280   : > { %1295 = vlog2.f32 %v731_v52  ;;  %v917_v51 = vmul.f32 %v1256_v18, %v882_v47  ;;  %v903_v52 = vadd.f32 %v899_v13, %v1704_v9 }
 0x281   : > { %v1274_v32 = vpop.eup %1273  ;;  %1297 = vrcp.f32 %v835_v34 }
 0x282   : > { %v1276_v59 = vpop.eup %1275  ;;  %1299 = vlog2.f32 %v737_v15  ;;  %v885_v43 = vpop.xlane.xlu1 %884  ;;  %v924_v1 = vsub.f32 %v917_v51, %v900_v39 }
 0x283   : > { %v748_v58 = vpop.xlane.xlu0 %747  ;;  %v1278_v4 = vpop.eup %1277  ;;  %v767_v54 = vmul.f32 0.6931472, %v1276_v59  ;;  %v919_v63 = vmul.f32 %v1260_v21, %v885_v43 }
 0x284   : > { %v759_v17 = vmul.f32 %v1274_v32, %v748_v58  ;;  %v911_v20 = vmul.f32 0.6931472, %v1278_v4  ;;  %v928_v41 = vadd.f32 %v924_v1, %v912_v6 }
 0x285   : > { %v1280_v48 = vpop.eup %1279  ;;  %v925_v14 = vsub.f32 %v919_v63, %v901_v7 }
 0x286   : > { %v1282_v44 = vpop.eup %1281  ;;  %v779_v62 = vmul.f32 0.6931472, %v1280_v48  ;;  %v774_v28 = vsub.f32 %v759_v17, %v767_v54  ;;  %v888_v45 = vpop.xlane.xlu1 %887  ;;  %v915_v30 = vadd.f32 %v911_v20, %v1712_v36 }
 0x287   : > { %v754_v37 = vpop.xlane.xlu0 %753  ;;  %v1284_v56 = vpop.eup %1283  ;;  %v921_v29 = vmul.f32 %v1264_v8, %v888_v45  ;;  %v929_v31 = vadd.f32 %v925_v14, %v913_v25 }
 0x288   : > { %v1286_v49 = vpop.eup %1285  ;;  %v763_v16 = vmul.f32 %v1282_v44, %v754_v37  ;;  %v771_v12 = vmul.f32 0.6931472, %v1284_v56  ;;  %v786_v55 = vadd.f32 %v779_v62, %v774_v28 }
 0x289   : > { %v1288_v0 = vpop.eup %1287  ;;  %v926_v34 = vsub.f32 %v921_v29, %v902_v23  ;;  %v783_v21 = vmul.f32 0.6931472, %v1286_v49 }
 0x28a   : > { %v1290_v42 = vpop.eup %1289  ;;  %v751_v35 = vpop.xlane.xlu1 %750  ;;  %v776_v19 = vsub.f32 %v763_v16, %v771_v12  ;;  %v932_v27 = vadd.f32 %v928_v41, %v786_v55 }
 0x28b   : > { %v757_v10 = vpop.xlane.xlu0 %756  ;;  %v1292_v11 = vpop.eup %1291  ;;  %v930_v8 = vadd.f32 %v926_v34, %v914_v60  ;;  %v773_v46 = vmul.f32 0.6931472, %v1290_v42 }
 0x28c   : > { %v1294_v22 = vpop.eup %1293  ;;  %v765_v2 = vmul.f32 %v1288_v0, %v757_v10  ;;  %v769_v15 = vmul.f32 0.6931472, %v1292_v11  ;;  %v788_v32 = vadd.f32 %v783_v21, %v776_v19  ;;  %v938_v50 = vsel %vm937_vm5, %v932_v27, 0.0  ;;  %v936_v0 = vld [vmem:[#allocation4] sm:$0x1] }
 0x28d   : > { %v761_v18 = vmul.f32 %v1294_v22, %v751_v35  ;;  %v1296_v40 = vpop.eup %1295 }
 0x28e   : > { %v1298_v26 = vpop.eup %1297  ;;  %v781_v24 = vmul.f32 0.6931472, %v1296_v40  ;;  %v891_v53 = vpop.xlane.xlu1 %890  ;;  %v777_v58 = vsub.f32 %v765_v2, %v773_v46  ;;  %v934_v48 = vadd.f32 %v930_v8, %v788_v32 }
 0x28f   : > { %v775_v47 = vsub.f32 %v761_v18, %v769_v15  ;;  %v1300_v33 = vpop.eup %1299  ;;  %v923_v3 = vmul.f32 %v1298_v26, %v891_v53 }
 0x290   : > { %v785_v4 = vmul.f32 0.6931472, %v1300_v33  ;;  %v941_v56 = vsel %vm937_vm5, %v934_v48, 0.0 }
 0x291   : > { %v787_v59 = vadd.f32 %v781_v24, %v775_v47  ;;  %v927_v43 = vsub.f32 %v923_v3, %v903_v52 }
 0x292   : > { %v789_v38 = vadd.f32 %v785_v4, %v777_v58 }
 0x293   : > { %v933_v17 = vadd.f32 %v929_v31, %v787_v59  ;;  %v931_v44 = vadd.f32 %v927_v43, %v915_v30 }
 0x295   : > { %v939_v51 = vsel %vm937_vm5, %v933_v17, 0.0  ;;  %v935_v37 = vadd.f32 %v931_v44, %v789_v38 }
 0x296   : > { %v940_v54 = vadd.f32 %v939_v51, %v938_v50 }
 0x297   : > { %v943_v57 = vsel %vm937_vm5, %v935_v37, 0.0 }
 0x298   : > { %v942_v9 = vadd.f32 %v941_v56, %v940_v54 }
 0x29a   : > { %v944_v39 = vadd.f32 %v943_v57, %v942_v9 }
 0x29c   : > { %945 = vadd.xlane.f32.xlu0 %v944_v39 }
 0x325   : > { %v946_v49 = vpop.xlane.xlu0 %945 }
 0x326   : > { %v947_v61 = vrot.slane %v946_v49, 4 }
 0x328   : > { %v948_v36 = vadd.f32 %v947_v61, %v946_v49 }
 0x32a   : > { %v949_v62 = vrot.slane %v948_v36, 2 }
 0x32c   : > { %v950_v28 = vadd.f32 %v949_v62, %v948_v36 }
 0x32e   : > { %v951_v63 = vrot.slane %v950_v28, 1 }
 0x330   : > { %v952_v45 = vadd.f32 %v951_v63, %v950_v28 }
 0x332   : > { %1139 = vpush %v952_v45 }
 0x363   : > { %s1140_s20 = spop %1139 }
 0x364   : > { %v954_v16 = vstv %s1140_s20 }
 0x365   : > { %v955_v23 = vadd.f32 %v954_v16, %v936_v0 }
 0x367   : > { %957 = vst.msk [vmem:[#allocation4] sm:$0x1] %vm956_vm6, %v955_v23 }
 0x368   : > { %1314 = shalt.err (!%p1311_p11)
}
 0x369   : > { %1142 = dma.vmem_to_hbm [thread:$0]  (%p1145_p4), %s966_s19, 16, %s1791_s2, [#allocation5]  }
 0x36a   : > { %1330 = dma.done.wait (%p1145_p4), [#allocation5], 16  }
 0x36b   : > { %1332 = vsyncadd (%p1145_p4), [#allocation5], 4294967280 }
 0x36c PF: > { %s13_s9 = sadd.s32 1, %s1335_s9  }
 0x36d   : > { %p10_p12 = scmp.ge.s32.totalorder %s13_s9, 5  }
 0x36f   :  { %12 = sbr.rel (!%p10_p12) target bundleno = 1 (0x1), region = 60 }
 0x374   :  { %978 = vsyncpa [#allocation5], 1 }
 0x375   :  { %980 = vsyncpa [#allocation5 + $0x1], 1 }

</bundles_post_ra>
